<compile_context>
chip_gen: v5e
topology: v5e:2x2
jax: 0.10.0
libtpu: 0.0.40
codegen_flags: <defaults>
</compile_context>

<pallas_src>
import functools

import jax
import jax.numpy as jnp
from jax.experimental import pallas as pl
from jax.experimental.pallas import tpu as pltpu


def _quant_kernel(x_ref, o_ref, *, islinear, scale):
    x = x_ref[...]
    if scale is None:
        # islinear=True & scale=None (identity) never reaches the kernel;
        # this branch is the relu case.
        o_ref[...] = jnp.maximum(x, jnp.zeros_like(x))
    else:
        inv_scale = 1.0 / float(scale)
        lo, hi = (-127.0, 127.0) if islinear else (0.0, 255.0)
        xf = x.astype(jnp.float32)                      # exact round/clamp in f32
        q = jnp.clip(jnp.round(xf * inv_scale), lo, hi)
        o_ref[...] = (q * float(scale)).astype(o_ref.dtype)


def quantization_forward(x, islinear, scale=None):
    """Forward pass of the Quantization module as a Pallas TPU kernel.

    x: any-shape float array (module is elementwise; NCHW conv activations
       are the typical input).
    islinear: Python bool (static).
    scale: Python float or None (static, like the nn.Module attribute).
    """
    # Identity configuration: no kernel, no HBM round trip.
    if islinear and scale is None:
        return x

    orig_shape = x.shape
    orig_dtype = x.dtype

    flat = x.reshape(-1)
    n = flat.shape[0]

    itemsize = jnp.dtype(orig_dtype).itemsize
    sub = {4: 8, 2: 16, 1: 32}.get(itemsize, 8)       # sublane packing granule
    lane = 128
    max_cols = 4096
    target_elems = (1 << 20) // itemsize              # ~1 MiB per block

    # Pick the widest lane dimension (multiple of 128, <= 4096) dividing n so
    # the common (power-of-two NCHW) case needs no padding at all.
    cols = lane
    c = max_cols
    while c >= lane:
        if n % c == 0:
            cols = c
            break
        c -= lane

    # Rows per block: ~1 MiB worth, multiple of the sublane granule.
    target_rows = max(sub, (max(1, target_elems // cols) // sub) * sub)

    rows0 = -(-n // cols)                             # ceil(n / cols)
    if rows0 <= target_rows:
        block_rows = rows0                            # single block == full dims
        rows = rows0
    else:
        block_rows = target_rows
        rows = -(-rows0 // block_rows) * block_rows   # round rows up to block

    n_pad = rows * cols
    padded = n_pad != n
    if padded:
        flat = jnp.pad(flat, (0, n_pad - n))
    x2d = flat.reshape(rows, cols)

    kernel = functools.partial(_quant_kernel, islinear=islinear, scale=scale)

    out2d = pl.pallas_call(
        kernel,
        out_shape=jax.ShapeDtypeStruct((rows, cols), orig_dtype),
        grid_spec=pltpu.PrefetchScalarGridSpec(
            num_scalar_prefetch=0,
            grid=(rows // block_rows,),
            in_specs=[pl.BlockSpec((block_rows, cols), lambda i: (i, 0))],
            out_specs=pl.BlockSpec((block_rows, cols), lambda i: (i, 0)),
        ),
        compiler_params=pltpu.CompilerParams(
            dimension_semantics=("parallel",)
        ),
    )(x2d)

    out = out2d.reshape(-1)
    if padded:
        out = out[:n]
    return out.reshape(orig_shape)


def _reference(x, islinear, scale):
    # Same math as the kernel (multiply by static reciprocal, f32 round/clamp),
    # which matches the PyTorch module up to FP rounding of the division.
    if islinear and scale is None:
        return x
    if scale is None:
        return jnp.maximum(x, jnp.zeros_like(x))
    lo, hi = (-127.0, 127.0) if islinear else (0.0, 255.0)
    xf = x.astype(jnp.float32)
    q = jnp.clip(jnp.round(xf * (1.0 / float(scale))), lo, hi)
    return (q * float(scale)).astype(x.dtype)


if __name__ == "__main__":
    key = jax.random.PRNGKey(0)
    k1, k2, k3 = jax.random.split(key, 3)

    # Typical NCHW activation (aligned, single block path).
    x_a = jax.random.normal(k1, (2, 4, 16, 16), dtype=jnp.float32) * 3.0
    # Larger aligned tensor -> multi-block grid path.
    x_b = jax.random.normal(k2, (8, 64, 32, 32), dtype=jnp.float32) * 3.0
    # Misaligned element count -> padded/tail-slice path.
    x_c = jax.random.normal(k3, (3, 5, 7, 9), dtype=jnp.float32) * 3.0
    # bf16 activation -> packed-dtype path (f32 upcast inside kernel).
    x_d = (jax.random.normal(k1, (2, 4, 16, 16), dtype=jnp.float32) * 3.0).astype(
        jnp.bfloat16
    )

    cases = [
        (x_a, True, None),    # linear, no scale -> identity (short-circuit)
        (x_a, True, 0.05),    # linear, symmetric int8 quant
        (x_a, False, None),   # non-linear, no scale -> relu
        (x_a, False, 0.02),   # non-linear, uint8 quant
        (x_b, True, 0.05),
        (x_b, False, 0.02),
        (x_c, False, 0.02),
        (x_d, False, 0.02),
    ]

    ok = True
    for x, islinear, scale in cases:
        out = quantization_forward(x, islinear, scale)
        out = jax.block_until_ready(out)
        ref = _reference(x, islinear, scale)
        if out.shape != x.shape or out.dtype != x.dtype:
            ok = False
        if not jnp.allclose(
            out.astype(jnp.float32), ref.astype(jnp.float32), atol=1e-6, rtol=1e-6
        ):
            ok = False

    if ok:
        print("KERNEL_OK")
    else:
        print("KERNEL_MISMATCH")
</pallas_src>

<mosaic_0001>
module attributes {stable_mosaic.version = 11 : i64} {
  func.func @_quant_kernel(%arg0: i32, %arg1: memref<1x2048xf32, #tpu.memory_space<vmem>>, %arg2: memref<1x2048xf32, #tpu.memory_space<vmem>>) attributes {dimension_semantics = [#tpu.dimension_semantics<parallel>], iteration_bounds = array<i64: 1>, scalar_prefetch = 0 : i64, scratch_operands = 0 : i64, tpu.core_type = #tpu.core_type<tc>, window_params = [{transform_indices = @transform_0, window_bounds = array<i64: 1, 2048>}, {transform_indices = @transform_1, window_bounds = array<i64: 1, 2048>}]} {
    %c0 = arith.constant 0 : index
    %c0_0 = arith.constant 0 : index
    %0 = vector.load %arg1[%c0, %c0_0] : memref<1x2048xf32, #tpu.memory_space<vmem>>, vector<1x2048xf32>
    %cst = arith.constant 2.000000e+01 : f32
    %1 = vector.broadcast %cst : f32 to vector<1x2048xf32>
    %2 = arith.mulf %0, %1 : vector<1x2048xf32>
    %3 = math.roundeven %2 : vector<1x2048xf32>
    %cst_1 = arith.constant -1.270000e+02 : f32
    %cst_2 = arith.constant 1.270000e+02 : f32
    %4 = vector.broadcast %cst_1 : f32 to vector<1x2048xf32>
    %5 = arith.maximumf %4, %3 : vector<1x2048xf32>
    %6 = vector.broadcast %cst_2 : f32 to vector<1x2048xf32>
    %7 = arith.minimumf %6, %5 : vector<1x2048xf32>
    %cst_3 = arith.constant 5.000000e-02 : f32
    %8 = vector.broadcast %cst_3 : f32 to vector<1x2048xf32>
    %9 = arith.mulf %7, %8 : vector<1x2048xf32>
    %c0_4 = arith.constant 0 : index
    %c0_5 = arith.constant 0 : index
    %10 = vector.load %arg2[%c0_4, %c0_5] : memref<1x2048xf32, #tpu.memory_space<vmem>>, vector<1x2048xf32>
    tpu.vector_store %arg2[%c0_4, %c0_5], %9 {strides = array<i32>} : memref<1x2048xf32, #tpu.memory_space<vmem>>, vector<1x2048xf32>,
    return
  }
  func.func @transform_0(%arg0: i32) -> (i32, i32) {
    %c0_i32 = arith.constant 0 : i32
    %c0_i32_0 = arith.constant 0 : i32
    return %arg0, %c0_i32 : i32, i32
  }
  func.func @transform_1(%arg0: i32) -> (i32, i32) {
    %c0_i32 = arith.constant 0 : i32
    %c0_i32_0 = arith.constant 0 : i32
    return %arg0, %c0_i32 : i32, i32
  }
}

</mosaic_0001>

<bundles_post_ra>
// kernel: tpu_custom_call.1
= control target key start
LH: loop header
LB: loop body
LE: loop exit
PB: predicated region body
PF: predicated region fallthrough
CT: control target
= control target key end

     0   :  { %6 = vsyncpa [#allocation3], 0  ;;  %s144_s0 = inlined_call_operand.hbm [shape: f32[1,2048], index: 0, kind: input, shape index: {}]   ;;  %s145_s1 = inlined_call_operand.hbm [shape: f32[1,2048], index: 1, kind: output, shape index: {}]  }
   0x1   :  { %7 = vsyncpa [#allocation4], 0  ;;  %s13_s8 = sshll.u32 %s144_s0, 4  ;;  %s126_s9 = smov [#allocation2]   ;;  %s14_s8 = int_to_ptr.hbm [resolvable:$true] %s13_s8 }
   0x2   :  { %s15_s10 = sshll.u32 %s126_s9, 4  ;;  %s16_s10 = int_to_ptr.vmem [resolvable:$true] %s15_s10 }
   0x3   :  { %18 = dma.hbm_to_vmem [thread:$0]  %s14_s8, 256, %s16_s10, [#allocation3]  }
   0x4   :  { %122 = dma.done.wait [#allocation3], 256  }
   0x5   :  { %123 = vsyncadd [#allocation3], 4294967040  ;;  %v23_v0 = vld [vmem:[#allocation2] sm:$0xff]  ;;  %v24_v1 = vld [vmem:[#allocation2 + $0x8] sm:$0xff]  ;;  %s127_s0 = smov [#allocation5]   ;;  %s44_s14 = sshll.u32 %s145_s1, 4  ;;  %s45_s14 = int_to_ptr.hbm [resolvable:$true] %s44_s14 }
   0x6   :  { %v25_v2 = vmul.f32 20.0, %v23_v0  ;;  %v26_v3 = vmul.f32 20.0, %v24_v1  ;;  %s42_s11 = sshll.u32 %s127_s0, 4  ;;  %s43_s11 = int_to_ptr.vmem [resolvable:$true] %s42_s11 }
   0x8   :  { %v58_v4 = vcvt.f32.s32 %v25_v2  ;;  %v56_v5 = vand.u32 2147483647, %v25_v2  ;;  %v66_v6 = vcvt.f32.s32 %v26_v3  ;;  %v61_v8 = vand.u32 2147483648, %v25_v2 }
   0x9   :  { %v64_v9 = vand.u32 2147483647, %v26_v3  ;;  %v69_v11 = vand.u32 2147483648, %v26_v3 }
   0xa   :  { %v59_v7 = vcvt.s32.f32 %v58_v4  ;;  %v67_v10 = vcvt.s32.f32 %v66_v6  ;;  %vm57_vm0 = vcmp.lt.f32.partialorder %v56_v5, 8388608.0 }
   0xb   :  { %vm65_vm1 = vcmp.lt.f32.partialorder %v64_v9, 8388608.0 }
   0xc   :  { %v60_v12 = vand.u32 2147483647, %v59_v7  ;;  %v68_v13 = vand.u32 2147483647, %v67_v10 }
   0xe   :  { %v62_v14 = vor.u32 %v61_v8, %v60_v12  ;;  %v70_v15 = vor.u32 %v69_v11, %v68_v13 }
  0x10   :  { %v63_v16 = vsel %vm57_vm0, %v62_v14, %v25_v2  ;;  %v71_v18 = vsel %vm65_vm1, %v70_v15, %v26_v3 }
  0x11   :  { %v54_v17 = vclamps-f32 %v63_v16, 127.0  ;;  %v55_v19 = vclamps-f32 %v71_v18, 127.0 }
  0x13   :  { %v33_v20 = vmul.f32 0.05, %v54_v17  ;;  %v34_v21 = vmul.f32 0.05, %v55_v19 }
  0x15   :  { %35 = vst [vmem:[#allocation5] sm:$0xff] %v33_v20 }
  0x16   :  { %36 = vst [vmem:[#allocation5 + $0x8] sm:$0xff] %v34_v21 }
  0x17   :  { %47 = dma.vmem_to_hbm [thread:$0]  %s43_s11, 256, %s45_s14, [#allocation4]  }
  0x18   :  { %124 = dma.done.wait [#allocation4], 256  }
  0x19   :  { %125 = vsyncadd [#allocation4], 4294967040 }
  0x1a   :  { %52 = vsyncpa [#allocation3], 1 }
  0x1b   :  { %53 = vsyncpa [#allocation4], 1 }

</bundles_post_ra>
